<compile_context>
chip_gen: v5e
topology: v5e:2x2
jax: 0.10.0
libtpu: 0.0.40
codegen_flags: <defaults>
</compile_context>

<pallas_src>
import jax
import jax.numpy as jnp
from jax.experimental import pallas as pl
from jax.experimental.pallas import tpu as pltpu

F32 = jnp.float32
BF16 = jnp.bfloat16


# ----------------------------- Pallas kernels -------------------------------------------

def _mm(a, w_ref, b_ref):
    """bf16 operands, f32 accumulation, f32 bias."""
    return jnp.dot(a.astype(BF16), w_ref[...], preferred_element_type=F32) + b_ref[...]


def _stn_pointmlp_kernel(x_ref, sw1, sb1, sw2, sb2, sw3, sb3, out_ref):
    """STN point-MLP C->64->128->1024 (ReLU) with streamed max-pool over point tiles."""
    @pl.when(pl.program_id(2) == 0)
    def _init():
        out_ref[...] = jnp.full_like(out_ref, -jnp.inf)

    x = x_ref[0]                                                # (TN, Cp) bf16
    h = jnp.maximum(_mm(x, sw1, sb1), 0.0)                      # (TN, 64)
    h = jnp.maximum(_mm(h, sw2, sb2), 0.0)                      # (TN, 128)
    h = jnp.maximum(_mm(h, sw3, sb3), 0.0)                      # (TN, 1024)
    out_ref[0, 0] = jnp.maximum(out_ref[0, 0], jnp.max(h, axis=0, keepdims=True))


def _main_pointmlp_kernel(x_ref, w1b_ref, b1, w2, b2, w3, b3, out_ref):
    """Main point-MLP with the CxC transform pre-folded into the per-batch first-layer
    weight (w1b_ref); no ReLU after the last layer; streamed max-pool."""
    @pl.when(pl.program_id(2) == 0)
    def _init():
        out_ref[...] = jnp.full_like(out_ref, -jnp.inf)

    x = x_ref[0]                                                # (TN, Cp) bf16
    h = jnp.maximum(jnp.dot(x, w1b_ref[0], preferred_element_type=F32) + b1[...], 0.0)
    h = jnp.maximum(_mm(h, w2, b2), 0.0)                        # (TN, 128)
    h = _mm(h, w3, b3)                                          # (TN, 1024), no ReLU (bn3 only)
    out_ref[0, 0] = jnp.maximum(out_ref[0, 0], jnp.max(h, axis=0, keepdims=True))


# ----------------------------- wrapper / glue --------------------------------------------

def _round_up(x, m):
    return (x + m - 1) // m * m


def _cdiv(a, b):
    return -(-a // b)


def _const_spec(arr):
    nd = arr.ndim
    return pl.BlockSpec(arr.shape, lambda b, c, t, _nd=nd: (0,) * _nd)


def _default_tile_target():
    """Generation-aware point-tile target.  ~2048 fits the default scoped VMEM on
    v5e/v7x; v6e (32 MiB default scoped, 128 MiB physical) can take ~4096."""
    try:
        kind = jax.devices()[0].device_kind.lower()
    except Exception:
        return 2048
    return 4096 if "v6" in kind else 2048


def _choose_tile_n(N, target):
    """Size the point tile from N so edge-pad waste stays small."""
    n_tiles = max(1, _cdiv(N, target))
    tn = _cdiv(N, n_tiles)
    mult = 128 if N >= 128 else 8
    return _round_up(tn, mult)


def _prep_point_mlp_weights(weights, C, Cp):
    """Pad the C-input weight to Cp rows, cast weights to bf16, keep biases f32 (1, out)."""
    w1, b1, w2, b2, w3, b3 = weights
    w1 = jnp.pad(w1, ((0, Cp - C), (0, 0)))
    return [w1.astype(BF16), b1.astype(F32),
            w2.astype(BF16), b2.astype(F32),
            w3.astype(BF16), b3.astype(F32)]


def _stn_fc_head(g, stn_fc, C):
    """Batched (B,1024)->(B,C,C) FC head in plain JAX (identity already folded into fb3)."""
    fw1, fb1, fw2, fb2, fw3, fb3 = stn_fc
    h = jax.nn.relu(g @ fw1 + fb1)
    h = jax.nn.relu(h @ fw2 + fb2)
    t = h @ fw3 + fb3
    return t.reshape(-1, C, C)


def pointnetfeat_forward(x_bcn, params, channels, tile_n=None):
    """x_bcn: (B, C, N) like PyTorch NCW input. Returns (global_feat, trans, trans_feat)."""
    C = channels
    B, C_in, N = x_bcn.shape
    assert C_in == C

    Cp = _round_up(C, 8)                                        # channel pad (sublane alignment)
    if tile_n is None:
        TN = _choose_tile_n(N, _default_tile_target())
    else:
        assert tile_n > 0 and tile_n % 8 == 0, "tile_n must be a positive multiple of 8"
        TN = tile_n
    N_pad = _round_up(N, TN)
    n_tiles = N_pad // TN

    # v7x megacore: when B == 1, split the tile axis into 2 parallel chunks so both
    # TensorCores get work; partial maxes are combined in the wrapper.
    n_chunks = 2 if (B == 1 and n_tiles >= 2 and n_tiles % 2 == 0) else 1
    tpc = n_tiles // n_chunks

    # Host-side prep: one bf16 copy, one pad.  Edge mode is exact: duplicated points
    # are a no-op under max-pool, and the padded channel rows of the first-layer
    # weights (sw1 / folded w1') are zero.
    x = jnp.transpose(x_bcn.astype(BF16), (0, 2, 1))            # (B, N, C) bf16
    x = jnp.pad(x, ((0, 0), (0, N_pad - N), (0, Cp - C)), mode="edge")  # (B, N_pad, Cp)

    stn_w = _prep_point_mlp_weights(params["stn_mlp"], C, Cp)

    x_spec = pl.BlockSpec((1, TN, Cp), lambda b, c, t: (b, c * tpc + t, 0))
    out_spec = pl.BlockSpec((1, 1, 1, 1024), lambda b, c, t: (b, c, 0, 0))
    out_shape = jax.ShapeDtypeStruct((B, n_chunks, 1, 1024), F32)
    cparams = pltpu.CompilerParams(
        dimension_semantics=("parallel", "parallel", "arbitrary"))

    mlp_flops = 2 * B * N_pad * (Cp * 64 + 64 * 128 + 128 * 1024)

    def nbytes(*arrs):
        return int(sum(a.size * a.dtype.itemsize for a in arrs))

    # ---- kernel 1: STN point-MLP + streamed max-pool ----
    g = pl.pallas_call(
        _stn_pointmlp_kernel,
        out_shape=out_shape,
        grid=(B, n_chunks, tpc),
        in_specs=[x_spec] + [_const_spec(w) for w in stn_w],
        out_specs=out_spec,
        compiler_params=cparams,
        cost_estimate=pl.CostEstimate(flops=int(mlp_flops), transcendentals=0,
                                      bytes_accessed=nbytes(x, *stn_w)
                                      + B * n_chunks * 1024 * 4),
    )(x, *stn_w)
    g = jnp.max(g, axis=(1, 2))                                 # (B, 1024) combine chunk partials

    # ---- STN FC head (M=1 per batch element): plain JAX, batched over B ----
    trans = _stn_fc_head(g, params["stn_fc"], C)                # (B, C, C) f32

    # ---- fold the per-batch CxC transform into the first main-MLP layer (exact) ----
    w1, b1, w2, b2, w3, b3 = params["mlp"]
    w1_eff = jnp.einsum("bij,jk->bik", trans, w1)               # (B, C, 64) f32
    w1_eff = jnp.pad(w1_eff, ((0, 0), (0, Cp - C), (0, 0))).astype(BF16)   # (B, Cp, 64)
    main_rest = [b1.astype(F32), w2.astype(BF16), b2.astype(F32),
                 w3.astype(BF16), b3.astype(F32)]

    # ---- kernel 2: main point-MLP (transform pre-folded) + streamed max-pool ----
    gfeat = pl.pallas_call(
        _main_pointmlp_kernel,
        out_shape=out_shape,
        grid=(B, n_chunks, tpc),
        in_specs=[x_spec,
                  pl.BlockSpec((1, Cp, 64), lambda b, c, t: (b, 0, 0))]
                 + [_const_spec(w) for w in main_rest],
        out_specs=out_spec,
        compiler_params=cparams,
        cost_estimate=pl.CostEstimate(flops=int(mlp_flops), transcendentals=0,
                                      bytes_accessed=nbytes(x, w1_eff, *main_rest)
                                      + B * n_chunks * 1024 * 4),
    )(x, w1_eff, *main_rest)
    gfeat = jnp.max(gfeat, axis=(1, 2))                         # (B, 1024)

    return gfeat, trans, None


# ----------------------------- parameter construction ------------------------------------

def _dense(key, fi, fo):
    kw, kb = jax.random.split(key)
    w = jax.random.normal(kw, (fi, fo), F32) / jnp.sqrt(fi)
    b = 0.01 * jax.random.normal(kb, (fo,), F32)
    return w, b


def _bn(key, c):
    k1, k2, k3, k4 = jax.random.split(key, 4)
    gamma = 1.0 + 0.1 * jax.random.normal(k1, (c,), F32)
    beta = 0.1 * jax.random.normal(k2, (c,), F32)
    mean = 0.1 * jax.random.normal(k3, (c,), F32)
    var = 0.5 + jax.random.uniform(k4, (c,), F32)
    return gamma, beta, mean, var


def _fold_bn(w, b, bn_params, eps=1e-5):
    gamma, beta, mean, var = bn_params
    scale = gamma * jax.lax.rsqrt(var + eps)
    return w * scale[None, :], ((b - mean) * scale + beta).reshape(1, -1)


def init_pointnetfeat_params(key, channels=6):
    C = channels
    keys = jax.random.split(key, 17)

    # STN point-MLP (conv1/bn1, conv2/bn2, conv3/bn3)
    sw1, sb1 = _fold_bn(*_dense(keys[0], C, 64), _bn(keys[1], 64))
    sw2, sb2 = _fold_bn(*_dense(keys[2], 64, 128), _bn(keys[3], 128))
    sw3, sb3 = _fold_bn(*_dense(keys[4], 128, 1024), _bn(keys[5], 1024))
    # STN FC head (fc1/bn4, fc2/bn5, fc3 + identity)
    fw1, fb1 = _fold_bn(*_dense(keys[6], 1024, 512), _bn(keys[7], 512))
    fw2, fb2 = _fold_bn(*_dense(keys[8], 512, 256), _bn(keys[9], 256))
    fw3, fb3r = _dense(keys[10], 256, C * C)
    fb3 = fb3r.reshape(1, C * C) + jnp.eye(C, dtype=F32).reshape(1, C * C)
    # main point-MLP (conv1/bn1, conv2/bn2, conv3/bn3 — no ReLU after bn3)
    w1, b1 = _fold_bn(*_dense(keys[11], C, 64), _bn(keys[12], 64))
    w2, b2 = _fold_bn(*_dense(keys[13], 64, 128), _bn(keys[14], 128))
    w3, b3 = _fold_bn(*_dense(keys[15], 128, 1024), _bn(keys[16], 1024))

    return dict(stn_mlp=(sw1, sb1, sw2, sb2, sw3, sb3),
                stn_fc=(fw1, fb1, fw2, fb2, fw3, fb3),
                mlp=(w1, b1, w2, b2, w3, b3))


# ----------------------------- pure-JAX reference ----------------------------------------

def reference_forward(x_bcn, params, channels):
    """Mirrors PyTorch op ordering (explicit bmm with trans) using the same
    bf16-operand / f32-accumulation precision policy as the kernels."""
    C = channels
    sw1, sb1, sw2, sb2, sw3, sb3 = params["stn_mlp"]
    w1, b1, w2, b2, w3, b3 = params["mlp"]
    x = jnp.transpose(x_bcn, (0, 2, 1)).astype(F32)             # (B, N, C)

    def mmb(a, w, b):
        return jnp.dot(a.astype(BF16), w.astype(BF16), preferred_element_type=F32) + b

    h = jax.nn.relu(mmb(x, sw1, sb1))
    h = jax.nn.relu(mmb(h, sw2, sb2))
    h = jax.nn.relu(mmb(h, sw3, sb3))
    g = jnp.max(h, axis=1)                                      # (B, 1024)
    trans = _stn_fc_head(g, params["stn_fc"], C)                # (B, C, C)
    xt = jnp.einsum("bnc,bcd->bnd", x.astype(BF16), trans.astype(BF16),
                    preferred_element_type=F32)
    h = jax.nn.relu(mmb(xt, w1, b1))
    h = jax.nn.relu(mmb(h, w2, b2))
    h = mmb(h, w3, b3)
    return jnp.max(h, axis=1), trans


# ----------------------------- main -------------------------------------------------------

if __name__ == "__main__":
    key = jax.random.PRNGKey(0)
    kx, kp, kx2, kx3 = jax.random.split(key, 4)

    B, C, N = 2, 6, 16                                          # small shapes; PyTorch input (B, C, N)
    x = jax.random.normal(kx, (B, C, N), dtype=F32)
    params = init_pointnetfeat_params(kp, channels=C)

    gfeat, trans, trans_feat = pointnetfeat_forward(x, params, channels=C)
    gfeat = jax.block_until_ready(gfeat)
    trans = jax.block_until_ready(trans)

    assert gfeat.shape == (B, 1024) and gfeat.dtype == F32
    assert trans.shape == (B, C, C) and trans.dtype == F32
    assert trans_feat is None

    # tolerances: trans path is op-for-op identical; gfeat differs only by the
    # algebraically-exact transform fold (extra bf16 rounding), hence 2e-2.
    ref_g, ref_t = reference_forward(x, params, channels=C)
    assert jnp.allclose(trans, ref_t, rtol=1e-2, atol=1e-2)
    assert jnp.allclose(gfeat, ref_g, rtol=2e-2, atol=2e-2)

    # exercise the multi-tile streamed max-pool + edge-padding path
    N2 = 40
    x2 = jax.random.normal(kx2, (B, C, N2), dtype=F32)
    gfeat2, trans2, _ = pointnetfeat_forward(x2, params, channels=C, tile_n=16)
    gfeat2 = jax.block_until_ready(gfeat2)
    ref_g2, ref_t2 = reference_forward(x2, params, channels=C)
    assert jnp.allclose(trans2, ref_t2, rtol=1e-2, atol=1e-2)
    assert jnp.allclose(gfeat2, ref_g2, rtol=2e-2, atol=2e-2)

    # exercise the B==1 megacore chunked partial-max path (grid = (1, 2, tiles/2))
    N3 = 64
    x3 = jax.random.normal(kx3, (1, C, N3), dtype=F32)
    gfeat3, trans3, _ = pointnetfeat_forward(x3, params, channels=C, tile_n=16)
    gfeat3 = jax.block_until_ready(gfeat3)
    ref_g3, ref_t3 = reference_forward(x3, params, channels=C)
    assert jnp.allclose(trans3, ref_t3, rtol=1e-2, atol=1e-2)
    assert jnp.allclose(gfeat3, ref_g3, rtol=2e-2, atol=2e-2)

    print("KERNEL_OK")
</pallas_src>

<mosaic_0001>
module attributes {stable_mosaic.version = 11 : i64} {
  func.func @_stn_pointmlp_kernel(%arg0: i32, %arg1: i32, %arg2: i32, %arg3: memref<1x16x8xbf16, #tpu.memory_space<vmem>>, %arg4: memref<8x64xbf16, #tpu.memory_space<vmem>>, %arg5: memref<1x64xf32, #tpu.memory_space<vmem>>, %arg6: memref<64x128xbf16, #tpu.memory_space<vmem>>, %arg7: memref<1x128xf32, #tpu.memory_space<vmem>>, %arg8: memref<128x1024xbf16, #tpu.memory_space<vmem>>, %arg9: memref<1x1024xf32, #tpu.memory_space<vmem>>, %arg10: memref<1x1x1x1024xf32, #tpu.memory_space<vmem>>) attributes {dimension_semantics = [#tpu.dimension_semantics<parallel>, #tpu.dimension_semantics<parallel>, #tpu.dimension_semantics<arbitrary>], iteration_bounds = array<i64: 2, 1, 1>, scalar_prefetch = 0 : i64, scratch_operands = 0 : i64, tpu.core_type = #tpu.core_type<tc>, window_params = [{transform_indices = @transform_0, window_bounds = array<i64: 1, 16, 8>}, {pipeline_mode = #tpu.pipeline_mode<synchronous>, transform_indices = @transform_1, window_bounds = array<i64: 8, 64>}, {pipeline_mode = #tpu.pipeline_mode<synchronous>, transform_indices = @transform_2, window_bounds = array<i64: 1, 64>}, {pipeline_mode = #tpu.pipeline_mode<synchronous>, transform_indices = @transform_3, window_bounds = array<i64: 64, 128>}, {pipeline_mode = #tpu.pipeline_mode<synchronous>, transform_indices = @transform_4, window_bounds = array<i64: 1, 128>}, {pipeline_mode = #tpu.pipeline_mode<synchronous>, transform_indices = @transform_5, window_bounds = array<i64: 128, 1024>}, {pipeline_mode = #tpu.pipeline_mode<synchronous>, transform_indices = @transform_6, window_bounds = array<i64: 1, 1024>}, {transform_indices = @transform_7, window_bounds = array<i64: 1, 1, 1, 1024>}]} {
    %c0_i32 = arith.constant 0 : i32
    %0 = arith.cmpi eq, %arg2, %c0_i32 : i32
    %1 = arith.extui %0 : i1 to i32
    %c0_i32_0 = arith.constant 0 : i32
    %2 = arith.cmpi ne, %1, %c0_i32_0 : i32
    scf.if %2 {
      %cst_29 = arith.constant 0xFF800000 : f32
      %36 = vector.broadcast %cst_29 : f32 to vector<1x1x1x1024xf32>
      %c0_30 = arith.constant 0 : index
      %c0_31 = arith.constant 0 : index
      %c0_32 = arith.constant 0 : index
      %c0_33 = arith.constant 0 : index
      %37 = vector.load %arg10[%c0_30, %c0_31, %c0_32, %c0_33] : memref<1x1x1x1024xf32, #tpu.memory_space<vmem>>, vector<1x1x1x1024xf32>
      tpu.vector_store %arg10[%c0_30, %c0_31, %c0_32, %c0_33], %36 {strides = array<i32>} : memref<1x1x1x1024xf32, #tpu.memory_space<vmem>>, vector<1x1x1x1024xf32>,
    } else {
    }
    %c0 = arith.constant 0 : index
    %c0_1 = arith.constant 0 : index
    %c0_2 = arith.constant 0 : index
    %3 = vector.load %arg3[%c0, %c0_1, %c0_2] : memref<1x16x8xbf16, #tpu.memory_space<vmem>>, vector<1x16x8xbf16>
    %4 = vector.shape_cast %3 : vector<1x16x8xbf16> to vector<16x8xbf16>
    %c0_3 = arith.constant 0 : index
    %c0_4 = arith.constant 0 : index
    %5 = vector.load %arg4[%c0_3, %c0_4] : memref<8x64xbf16, #tpu.memory_space<vmem>>, vector<8x64xbf16>
    %cst = arith.constant dense<0.000000e+00> : vector<16x64xf32>
    %6 = tpu.matmul %4, %5, %cst {dimension_numbers = #tpu.dot_dimension_numbers<[1], [0], [0], [1], [0, 0, 1, 1], [], []>} : vector<16x8xbf16>, vector<8x64xbf16>, vector<16x64xf32> -> vector<16x64xf32>
    %c0_5 = arith.constant 0 : index
    %c0_6 = arith.constant 0 : index
    %7 = vector.load %arg5[%c0_5, %c0_6] : memref<1x64xf32, #tpu.memory_space<vmem>>, vector<1x64xf32>
    %8 = vector.broadcast %7 : vector<1x64xf32> to vector<16x64xf32>
    %9 = arith.addf %6, %8 : vector<16x64xf32>
    %cst_7 = arith.constant 0.000000e+00 : f32
    %10 = vector.broadcast %cst_7 : f32 to vector<16x64xf32>
    %11 = arith.maximumf %9, %10 : vector<16x64xf32>
    %12 = arith.truncf %11 : vector<16x64xf32> to vector<16x64xbf16>
    %c0_8 = arith.constant 0 : index
    %c0_9 = arith.constant 0 : index
    %13 = vector.load %arg6[%c0_8, %c0_9] : memref<64x128xbf16, #tpu.memory_space<vmem>>, vector<64x128xbf16>
    %cst_10 = arith.constant dense<0.000000e+00> : vector<16x128xf32>
    %14 = tpu.matmul %12, %13, %cst_10 {dimension_numbers = #tpu.dot_dimension_numbers<[1], [0], [0], [1], [0, 0, 1, 1], [], []>} : vector<16x64xbf16>, vector<64x128xbf16>, vector<16x128xf32> -> vector<16x128xf32>
    %c0_11 = arith.constant 0 : index
    %c0_12 = arith.constant 0 : index
    %15 = vector.load %arg7[%c0_11, %c0_12] : memref<1x128xf32, #tpu.memory_space<vmem>>, vector<1x128xf32>
    %16 = vector.broadcast %15 : vector<1x128xf32> to vector<16x128xf32>
    %17 = arith.addf %14, %16 : vector<16x128xf32>
    %cst_13 = arith.constant 0.000000e+00 : f32
    %18 = vector.broadcast %cst_13 : f32 to vector<16x128xf32>
    %19 = arith.maximumf %17, %18 : vector<16x128xf32>
    %20 = arith.truncf %19 : vector<16x128xf32> to vector<16x128xbf16>
    %c0_14 = arith.constant 0 : index
    %c0_15 = arith.constant 0 : index
    %21 = vector.load %arg8[%c0_14, %c0_15] : memref<128x1024xbf16, #tpu.memory_space<vmem>>, vector<128x1024xbf16>
    %cst_16 = arith.constant dense<0.000000e+00> : vector<16x1024xf32>
    %22 = tpu.matmul %20, %21, %cst_16 {dimension_numbers = #tpu.dot_dimension_numbers<[1], [0], [0], [1], [0, 0, 1, 1], [], []>} : vector<16x128xbf16>, vector<128x1024xbf16>, vector<16x1024xf32> -> vector<16x1024xf32>
    %c0_17 = arith.constant 0 : index
    %c0_18 = arith.constant 0 : index
    %23 = vector.load %arg9[%c0_17, %c0_18] : memref<1x1024xf32, #tpu.memory_space<vmem>>, vector<1x1024xf32>
    %24 = vector.broadcast %23 : vector<1x1024xf32> to vector<16x1024xf32>
    %25 = arith.addf %22, %24 : vector<16x1024xf32>
    %cst_19 = arith.constant 0.000000e+00 : f32
    %26 = vector.broadcast %cst_19 : f32 to vector<16x1024xf32>
    %27 = arith.maximumf %25, %26 : vector<16x1024xf32>
    %c0_20 = arith.constant 0 : index
    %c0_21 = arith.constant 0 : index
    %c0_22 = arith.constant 0 : index
    %c0_23 = arith.constant 0 : index
    %28 = vector.load %arg10[%c0_20, %c0_21, %c0_22, %c0_23] : memref<1x1x1x1024xf32, #tpu.memory_space<vmem>>, vector<1x1x1x1024xf32>
    %29 = vector.shape_cast %28 : vector<1x1x1x1024xf32> to vector<1x1024xf32>
    %cst_24 = arith.constant dense<0xFF800000> : vector<1024xf32>
    %30 = vector.multi_reduction <maximumf>, %27, %cst_24 [0] : vector<16x1024xf32> to vector<1024xf32>
    %31 = vector.shape_cast %30 : vector<1024xf32> to vector<1x1024xf32>
    %32 = arith.maximumf %29, %31 : vector<1x1024xf32>
    %c0_25 = arith.constant 0 : index
    %c0_26 = arith.constant 0 : index
    %c0_27 = arith.constant 0 : index
    %c0_28 = arith.constant 0 : index
    %33 = vector.load %arg10[%c0_25, %c0_26, %c0_27, %c0_28] : memref<1x1x1x1024xf32, #tpu.memory_space<vmem>>, vector<1x1x1x1024xf32>
    %34 = vector.shape_cast %33 : vector<1x1x1x1024xf32> to vector<1x1024xf32>
    %35 = vector.shape_cast %32 : vector<1x1024xf32> to vector<1x1x1x1024xf32>
    tpu.vector_store %arg10[%c0_25, %c0_26, %c0_27, %c0_28], %35 {strides = array<i32>} : memref<1x1x1x1024xf32, #tpu.memory_space<vmem>>, vector<1x1x1x1024xf32>,
    return
  }
  func.func @transform_0(%arg0: i32, %arg1: i32, %arg2: i32) -> (i32, i32, i32) {
    %c1_i32 = arith.constant 1 : i32
    %0 = arith.muli %arg1, %c1_i32 : i32
    %1 = arith.addi %0, %arg2 : i32
    %c0_i32 = arith.constant 0 : i32
    %c0_i32_0 = arith.constant 0 : i32
    return %arg0, %1, %c0_i32 : i32, i32, i32
  }
  func.func @transform_1(%arg0: i32, %arg1: i32, %arg2: i32) -> (i32, i32) {
    %c0_i32 = arith.constant 0 : i32
    %c0_i32_0 = arith.constant 0 : i32
    %c0_i32_1 = arith.constant 0 : i32
    return %c0_i32, %c0_i32_0 : i32, i32
  }
  func.func @transform_2(%arg0: i32, %arg1: i32, %arg2: i32) -> (i32, i32) {
    %c0_i32 = arith.constant 0 : i32
    %c0_i32_0 = arith.constant 0 : i32
    %c0_i32_1 = arith.constant 0 : i32
    return %c0_i32, %c0_i32_0 : i32, i32
  }
  func.func @transform_3(%arg0: i32, %arg1: i32, %arg2: i32) -> (i32, i32) {
    %c0_i32 = arith.constant 0 : i32
    %c0_i32_0 = arith.constant 0 : i32
    %c0_i32_1 = arith.constant 0 : i32
    return %c0_i32, %c0_i32_0 : i32, i32
  }
  func.func @transform_4(%arg0: i32, %arg1: i32, %arg2: i32) -> (i32, i32) {
    %c0_i32 = arith.constant 0 : i32
    %c0_i32_0 = arith.constant 0 : i32
    %c0_i32_1 = arith.constant 0 : i32
    return %c0_i32, %c0_i32_0 : i32, i32
  }
  func.func @transform_5(%arg0: i32, %arg1: i32, %arg2: i32) -> (i32, i32) {
    %c0_i32 = arith.constant 0 : i32
    %c0_i32_0 = arith.constant 0 : i32
    %c0_i32_1 = arith.constant 0 : i32
    return %c0_i32, %c0_i32_0 : i32, i32
  }
  func.func @transform_6(%arg0: i32, %arg1: i32, %arg2: i32) -> (i32, i32) {
    %c0_i32 = arith.constant 0 : i32
    %c0_i32_0 = arith.constant 0 : i32
    %c0_i32_1 = arith.constant 0 : i32
    return %c0_i32, %c0_i32_0 : i32, i32
  }
  func.func @transform_7(%arg0: i32, %arg1: i32, %arg2: i32) -> (i32, i32, i32, i32) {
    %c0_i32 = arith.constant 0 : i32
    %c0_i32_0 = arith.constant 0 : i32
    %c0_i32_1 = arith.constant 0 : i32
    return %arg0, %arg1, %c0_i32, %c0_i32_0 : i32, i32, i32, i32
  }
}

</mosaic_0001>

<bundles_post_ra>
// kernel: tpu_custom_call.1
= control target key start
LH: loop header
LB: loop body
LE: loop exit
PB: predicated region body
PF: predicated region fallthrough
CT: control target
= control target key end

     0   :  { %s1988_s0 = inlined_call_operand.vmem [shape: bf16[2,16,8], index: 0, kind: input, shape index: {}]   ;;  %s1989_s1 = inlined_call_operand.vmem [shape: bf16[8,64], index: 1, kind: input, shape index: {}]   ;;  %s1990_s2 = inlined_call_operand.vmem [shape: f32[1,64], index: 2, kind: input, shape index: {}]   ;;  %s1991_s3 = inlined_call_operand.hbm [shape: bf16[64,128], index: 3, kind: input, shape index: {}]   ;;  %s1992_s4 = inlined_call_operand.vmem [shape: f32[1,128], index: 4, kind: input, shape index: {}]   ;;  %s1993_s5 = inlined_call_operand.hbm [shape: bf16[128,1024], index: 5, kind: input, shape index: {}]   ;;  %s1994_s6 = inlined_call_operand.vmem [shape: f32[1,1024], index: 6, kind: input, shape index: {}]   ;;  %s1995_s7 = inlined_call_operand.hbm [shape: f32[2,1,1,1024], index: 7, kind: output, shape index: {}]  }
   0x1   :  { %1996 = sst [smem:[#allocation11_spill]] %s1991_s3 }
   0x2   :  { %12 = vsyncpa [#allocation3], 0 }
   0x3   :  { %13 = vsyncpa [#allocation6], 0 }
   0x4   :  { %14 = vsyncpa [#allocation4], 0 }
   0x5   :  { %16 = vsyncpa [#allocation4 + $0x1], 0  ;;  %s1832_s24 = smov 0   ;;  %s1834_s25 = smov 0  }
   0x6   :  { %s1836_s26 = smov 0   ;;  %s1838_s27 = smov 0  }
   0x7   :  { %s1840_s28 = smov 0   ;;  %s1842_s29 = smov 0  }
   0x8 LB: > { %s1191_s30 = sadd.s32 4294967295, %s1784_s29   ;;  %s1192_s8 = sadd.s32 4294967294, %s1784_s29   ;;  %s1784_s29 = sphi %s1842_s29, %s22_s29   ;;  %s1780_s28 = sphi %s1840_s28, %s2006_s28   ;;  %s1776_s27 = sphi %s1838_s27, %s2005_s27   ;;  %s1772_s26 = sphi %s1836_s26, %s2004_s26   ;;  %s1768_s25 = sphi %s1834_s25, %s2003_s25   ;;  %s1764_s24 = sphi %s1832_s24, %s2002_s24  }
   0x9   : > { %s41_s9 = sadd.s32 1, %s1780_s28  ;;  %s206_s10 = sadd.s32 1, %s1772_s26 }
   0xa   : > { %p43_p0 = scmp.ge.s32.totalorder %s41_s9, 2  ;;  %p216_p1 = scmp.ne.s32.totalorder %s1772_s26, %s1768_s25 }
   0xb   : > { %p217_p2 = scmp.eq.s32.totalorder %s1191_s30, 1  ;;  %p222_p3 = scmp.ne.s32.totalorder %s1768_s25, %s1764_s24 }
   0xc   : > { %s2008_s9 = smov (%p43_p0, %s41_s9), 0  ;;  %p223_p5 = scmp.eq.s32.totalorder %s1192_s8, 1 }
   0xd   : > { %p1872_p4 = por %p217_p2, %p216_p1  ;;  %s201_s12 = ssub.s32 %s1780_s28, %s2008_s9 }
   0xe   : > { %p1193_p6 = scmp.ge.s32.totalorder %s1784_s29, 1  ;;  %p204_p7 = scmp.eq.s32.totalorder %s201_s12, 0 }
   0xf   : > { %p1879_p8 = por %p223_p5, %p222_p3  ;;  %p230_p9 = scmp.lt.s32.totalorder %s1784_s29, 3 }
  0x10   : > { %s1885_s14 = scalar_select %p204_p7, %s1772_s26, %s206_s10  }
  0x11   : > { %p1887_p10 = pnand %p1193_p6, %p230_p9  ;;  %p1891_p11 = scmp.eq.s32.totalorder %s1191_s30, 0 }
  0x12   : > { %s2001_s3 = sld [smem:[#allocation11_spill]]  ;;  %s1786_s20 = smov [#allocation2]  }
  0x13   : > { %p1565_p12 = pneg %p1887_p10  ;;  %s249_s21 = sshll.u32 %s1786_s20, 4  ;;  %s250_s21 = int_to_ptr.vmem [resolvable:$true] %s249_s21 }
  0x14   : > { %s264_s30 = sshll.u32 %s1993_s5, 4  ;;  %s1787_s8 = smov 64   ;;  %s265_s30 = int_to_ptr.hbm [resolvable:$true] %s264_s30 }
  0x15   : > { %p1566_p13 = pnand %p1891_p11, %p1565_p12  ;;  %s1788_s10 = smov 4  }
  0x16   : > { %s1789_s12 = smov [#allocation5]   ;;  %s1790_s18 = smov 512  }
  0x17   : > { %s266_s17 = sshll.u32 %s1789_s12, 4  ;;  %300 = sbr.rel (%p1887_p10) target bundleno = 500 (0x1f4), region = 48  ;;  %s267_s17 = int_to_ptr.vmem [resolvable:$true] %s266_s17 }
  0x18   : > { %s247_s19 = sshll.u32 %s2001_s3, 4  ;;  %s1791_s3 = smov 32   ;;  %s248_s19 = int_to_ptr.hbm [resolvable:$true] %s247_s19 }
  0x19   : > { %1568 = dma.hbm_to_vmem [thread:$0]  (!%p1566_p13), %s248_s19, 512, %s250_s21, [#allocation3], %s1787_s8, %s1787_s8, %s1788_s10  }
  0x1a   : > { %1571 = dma.hbm_to_vmem [thread:$0]  (!%p1566_p13), %s265_s30, 8192, %s267_s17, [#allocation6], %s1790_s18, %s1790_s18, %s1791_s3  }
  0x1c   : > { %1751 = dma.done.wait (%p1891_p11), [#allocation3], 512  }
  0x1d   : > { %1753 = vsyncadd (%p1891_p11), [#allocation3], 4294966784 }
  0x1e   : > { %1755 = dma.done.wait (%p1891_p11), [#allocation6], 8192  }
  0x1f   : > { %1757 = vsyncadd (%p1891_p11), [#allocation6], 4294959104  ;;  %p345_p0 = scmp.lt.s32.totalorder %s1776_s27, 1  ;;  %vm377_vm0 = vcmask 1043456   ;;  %v363_v0 = vld [vmem:[%s1989_s1] sm:$0xf] }
  0x20   : > { %v379_v1 = vsel %vm377_vm0, %v363_v0, 0  ;;  %vm373_vm1 = vcmask 64512   ;;  %v1490_v3 = vld [vmem:[#allocation2 + $0x18] sm:$0xff]  ;;  %v1489_v4 = vld [vmem:[#allocation2 + $0x10] sm:$0xff]  ;;  %v1488_v5 = vld [vmem:[#allocation2 + $0x8] sm:$0xff]  ;;  %vm434_vm2 = vcmask 523264  }
  0x21   : > { %s346_s19 = scalar_select %p345_p0, %s1776_s27, 1  ;;  %388 = vmatpush.bf16.msra.mxu0 %v379_v1  ;;  %442 = vmatpush.bf16.msra.mxu1 %v1490_v3  ;;  %v1487_v6 = vld [vmem:[#allocation2] sm:$0xff]  ;;  %v1459_v12 = vld [vmem:[#allocation5 + $0x1c8] sm:$0xf]  ;;  %v1548_v16 = vld [vmem:[#allocation5 + $0x1cc] sm:$0xf] }
  0x22   : > { %v1451_v7 = vld [vmem:[#allocation5 + $0x1c0] sm:$0xf]  ;;  %v1547_v9 = vld [vmem:[#allocation5 + $0x1c4] sm:$0xf]  ;;  %v1552_v13 = vld [vmem:[#allocation5 + $0x1e4] sm:$0xf0] }
  0x23   : > { %s1485_s3 = sshll.u32 %s346_s19, 3  ;;  %v1551_v8 = vld [vmem:[#allocation5 + $0x1dc] sm:$0xf0]  ;;  %v1453_v11 = vld [vmem:[#allocation5 + $0x1e0] sm:$0xf0]  ;;  %v1460_v15 = vor.u32 %v1552_v13, %v1459_v12  ;;  %s340_s18 = sand.u32 1, %s1768_s25  }
  0x24   : > { %s352_s21 = scalar_lea.vmem %s1988_s0, %s1485_s3  ;;  %v1452_v10 = vor.u32 %v1551_v8, %v1451_v7  ;;  %v1456_v14 = vor.u32 %v1547_v9, %v1453_v11  ;;  %v1461_v17 = vld [vmem:[#allocation5 + $0x1e8] sm:$0xf0]  ;;  %v1419_v18 = vld [vmem:[#allocation5 + $0x180] sm:$0xf]  ;;  %v1539_v21 = vld [vmem:[#allocation5 + $0x184] sm:$0xf] }
  0x25   : > { %v1486_v2 = vld [vmem:[%s352_s21] sm:$0xff]  ;;  %443 = vmatpush.bf16.msra.mxu1 %v1489_v4  ;;  %v1464_v19 = vor.u32 %v1548_v16, %v1461_v17  ;;  %885 = vmatpush.bf16.msrb.mxu0 %v1460_v15  ;;  %v1427_v25 = vld [vmem:[#allocation5 + $0x188] sm:$0xf]  ;;  %v1540_v27 = vld [vmem:[#allocation5 + $0x18c] sm:$0xf]  ;;  %s1946_s19 = sshll.u32 %s340_s18, 3 }
  0x26   : > { %1207 = vmatmul.msk.bf16.vlgmr.msra.gmra.mxu0 %vm373_vm1, %v1486_v2  ;;  %857 = vmatpush.bf16.msra.mxu2 %v1452_v10  ;;  %v1543_v20 = vld [vmem:[#allocation5 + $0x19c] sm:$0xf0]  ;;  %v1421_v22 = vld [vmem:[#allocation5 + $0x1a0] sm:$0xf0]  ;;  %v1544_v26 = vld [vmem:[#allocation5 + $0x1a4] sm:$0xf0] }
  0x27   : > { %871 = vmatpush.bf16.msra.mxu3 %v1456_v14  ;;  %v1420_v23 = vor.u32 %v1543_v20, %v1419_v18  ;;  %v1424_v24 = vor.u32 %v1539_v21, %v1421_v22  ;;  %v1428_v28 = vor.u32 %v1544_v26, %v1427_v25  ;;  %v1429_v29 = vld [vmem:[#allocation5 + $0x1a8] sm:$0xf0]  ;;  %v1387_v30 = vld [vmem:[#allocation5 + $0x140] sm:$0xf]  ;;  %v1531_v33 = vld [vmem:[#allocation5 + $0x144] sm:$0xf] }
  0x28   : > { %v1535_v31 = vld [vmem:[#allocation5 + $0x15c] sm:$0xf0]  ;;  %v1432_v32 = vor.u32 %v1540_v27, %v1429_v29  ;;  %v1389_v34 = vld [vmem:[#allocation5 + $0x160] sm:$0xf0]  ;;  %v1395_v35 = vld [vmem:[#allocation5 + $0x148] sm:$0xf] }
  0x29   : > { %444 = vmatpush.bf16.msra.mxu1 %v1488_v5  ;;  %v1388_v36 = vor.u32 %v1535_v31, %v1387_v30  ;;  %v1536_v37 = vld [vmem:[#allocation5 + $0x164] sm:$0xf0]  ;;  %v1532_v38 = vld [vmem:[#allocation5 + $0x14c] sm:$0xf]  ;;  %886 = vmatpush.bf16.msrb.mxu0 %v1428_v28  ;;  %v1392_v40 = vor.u32 %v1531_v33, %v1389_v34  ;;  %v1355_v42 = vld [vmem:[#allocation5 + $0x100] sm:$0xf] }
  0x2a   : > { %858 = vmatpush.bf16.msra.mxu2 %v1420_v23  ;;  %v1397_v39 = vld [vmem:[#allocation5 + $0x168] sm:$0xf0]  ;;  %v1396_v41 = vor.u32 %v1536_v37, %v1395_v35  ;;  %v1527_v43 = vld [vmem:[#allocation5 + $0x11c] sm:$0xf0]  ;;  %v1523_v44 = vld [vmem:[#allocation5 + $0x104] sm:$0xf] }
  0x2b   : > { %872 = vmatpush.bf16.msra.mxu3 %v1424_v24  ;;  %v1400_v45 = vor.u32 %v1532_v38, %v1397_v39  ;;  %v1357_v46 = vld [vmem:[#allocation5 + $0x120] sm:$0xf0]  ;;  %v1363_v47 = vld [vmem:[#allocation5 + $0x108] sm:$0xf]  ;;  %v1524_v49 = vld [vmem:[#allocation5 + $0x10c] sm:$0xf]  ;;  %v1356_v51 = vor.u32 %v1527_v43, %v1355_v42 }
  0x2c   : > { %v1528_v48 = vld [vmem:[#allocation5 + $0x124] sm:$0xf0]  ;;  %v1365_v50 = vld [vmem:[#allocation5 + $0x128] sm:$0xf0]  ;;  %v1360_v52 = vor.u32 %v1523_v44, %v1357_v46  ;;  %v1323_v54 = vld [vmem:[#allocation5 + $0xc0] sm:$0xf] }
  0x2d   : > { %445 = vmatpush.bf16.msra.mxu1 %v1487_v6  ;;  %887 = vmatpush.bf16.msrb.mxu0 %v1396_v41  ;;  %v1364_v53 = vor.u32 %v1528_v48, %v1363_v47  ;;  %v1519_v55 = vld [vmem:[#allocation5 + $0xdc] sm:$0xf0]  ;;  %v1515_v56 = vld [vmem:[#allocation5 + $0xc4] sm:$0xf]  ;;  %v1368_v57 = vor.u32 %v1524_v49, %v1365_v50  ;;  %v1331_v59 = vld [vmem:[#allocation5 + $0xc8] sm:$0xf] }
  0x2e   : > { %859 = vmatpush.bf16.msra.mxu2 %v1388_v36  ;;  %v1325_v58 = vld [vmem:[#allocation5 + $0xe0] sm:$0xf0]  ;;  %v1520_v60 = vld [vmem:[#allocation5 + $0xe4] sm:$0xf0]  ;;  %v1516_v61 = vld [vmem:[#allocation5 + $0xcc] sm:$0xf]  ;;  %v1324_v63 = vor.u32 %v1519_v55, %v1323_v54 }
  0x2f   : > { %873 = vmatpush.bf16.msra.mxu3 %v1392_v40  ;;  %v1333_v62 = vld [vmem:[#allocation5 + $0xe8] sm:$0xf0]  ;;  %v1328_v0 = vor.u32 %v1515_v56, %v1325_v58  ;;  %v1332_v1 = vor.u32 %v1520_v60, %v1331_v59  ;;  %v1291_v2 = vld [vmem:[#allocation5 + $0x80] sm:$0xf]  ;;  %v1507_v4 = vld [vmem:[#allocation5 + $0x84] sm:$0xf] }
  0x30   : > { %v1511_v3 = vld [vmem:[#allocation5 + $0x9c] sm:$0xf0]  ;;  %v1336_v6 = vor.u32 %v1516_v61, %v1333_v62  ;;  %v1293_v7 = vld [vmem:[#allocation5 + $0xa0] sm:$0xf0]  ;;  %v1299_v8 = vld [vmem:[#allocation5 + $0x88] sm:$0xf] }
  0x31   : > { %899 = vmatpush.bf16.msrb.mxu1 %v1464_v19  ;;  %888 = vmatpush.bf16.msrb.mxu0 %v1364_v53  ;;  %v1512_v9 = vld [vmem:[#allocation5 + $0xa4] sm:$0xf0]  ;;  %v1508_v10 = vld [vmem:[#allocation5 + $0x8c] sm:$0xf]  ;;  %v1636_v12 = vld [vmem:[%s1990_s2] ss:$0 sm:$0xff]  ;;  %v1292_v13 = vor.u32 %v1511_v3, %v1291_v2  ;;  %v1296_v14 = vor.u32 %v1507_v4, %v1293_v7 }
  0x32   : > { %860 = vmatpush.bf16.msra.mxu2 %v1356_v51  ;;  %v1301_v11 = vld [vmem:[#allocation5 + $0xa8] sm:$0xf0]  ;;  %v1300_v15 = vor.u32 %v1512_v9, %v1299_v8  ;;  %v1259_v16 = vld [vmem:[#allocation5 + $0x40] sm:$0xf]  ;;  %v1499_v18 = vld [vmem:[#allocation5 + $0x44] sm:$0xf] }
  0x33   : > { %874 = vmatpush.bf16.msra.mxu3 %v1360_v52  ;;  %v1503_v17 = vld [vmem:[#allocation5 + $0x5c] sm:$0xf0]  ;;  %v1304_v19 = vor.u32 %v1508_v10, %v1301_v11  ;;  %v1261_v20 = vld [vmem:[#allocation5 + $0x60] sm:$0xf0]  ;;  %v1267_v21 = vld [vmem:[#allocation5 + $0x48] sm:$0xf] }
  0x34   : > { %v1504_v22 = vld [vmem:[#allocation5 + $0x64] sm:$0xf0]  ;;  %v1500_v23 = vld [vmem:[#allocation5 + $0x4c] sm:$0xf]  ;;  %v1260_v25 = vor.u32 %v1503_v17, %v1259_v16  ;;  %v1264_v27 = vor.u32 %v1499_v18, %v1261_v20  ;;  %v1227_v29 = vld [vmem:[#allocation5] sm:$0xf] }
  0x35   : > { %900 = vmatpush.bf16.msrb.mxu1 %v1432_v32  ;;  %889 = vmatpush.bf16.msrb.mxu0 %v1332_v1  ;;  %v1269_v24 = vld [vmem:[#allocation5 + $0x68] sm:$0xf0]  ;;  %v1268_v28 = vor.u32 %v1504_v22, %v1267_v21  ;;  %v1495_v30 = vld [vmem:[#allocation5 + $0x1c] sm:$0xf0]  ;;  %v1491_v33 = vld [vmem:[#allocation5 + $0x4] sm:$0xf] }
  0x36   : > { %861 = vmatpush.bf16.msra.mxu2 %v1324_v63  ;;  %v1272_v32 = vor.u32 %v1500_v23, %v1269_v24  ;;  %v1229_v34 = vld [vmem:[#allocation5 + $0x20] sm:$0xf0]  ;;  %v1235_v35 = vld [vmem:[#allocation5 + $0x8] sm:$0xf]  ;;  %v1492_v38 = vld [vmem:[#allocation5 + $0xc] sm:$0xf]  ;;  %v1228_v40 = vor.u32 %v1495_v30, %v1227_v29 }
  0x37   : > { %875 = vmatpush.bf16.msra.mxu3 %v1328_v0  ;;  %v1496_v37 = vld [vmem:[#allocation5 + $0x24] sm:$0xf0]  ;;  %v1237_v39 = vld [vmem:[#allocation5 + $0x28] sm:$0xf0]  ;;  %v1232_v43 = vor.u32 %v1491_v33, %v1229_v34  ;;  %v1467_v47 = vld [vmem:[#allocation5 + $0x1d0] sm:$0xf] }
  0x38   : > { %v1236_v44 = vor.u32 %v1496_v37, %v1235_v35  ;;  %v1553_v48 = vld [vmem:[#allocation5 + $0x1ec] sm:$0xf0]  ;;  %v1549_v49 = vld [vmem:[#allocation5 + $0x1d4] sm:$0xf]  ;;  %v1475_v52 = vld [vmem:[#allocation5 + $0x1d8] sm:$0xf] }
  0x39   : > { %901 = vmatpush.bf16.msrb.mxu1 %v1400_v45  ;;  %890 = vmatpush.bf16.msrb.mxu0 %v1300_v15  ;;  %v1240_v45 = vor.u32 %v1492_v38, %v1237_v39  ;;  %v1468_v50 = vor.u32 %v1553_v48, %v1467_v47  ;;  %v1469_v51 = vld [vmem:[#allocation5 + $0x1f0] sm:$0xf0]  ;;  %v1554_v53 = vld [vmem:[#allocation5 + $0x1f4] sm:$0xf0]  ;;  %v1550_v56 = vld [vmem:[#allocation5 + $0x1dc] sm:$0xf] }
  0x3a   : > { %862 = vmatpush.bf16.msra.mxu2 %v1292_v13  ;;  %v1472_v54 = vor.u32 %v1549_v49, %v1469_v51  ;;  %v1476_v55 = vor.u32 %v1554_v53, %v1475_v52  ;;  %v1435_v59 = vld [vmem:[#allocation5 + $0x190] sm:$0xf]  ;;  %v1541_v61 = vld [vmem:[#allocation5 + $0x194] sm:$0xf]  ;;  %v1443_v0 = vld [vmem:[#allocation5 + $0x198] sm:$0xf] }
  0x3b   : > { %876 = vmatpush.bf16.msra.mxu3 %v1296_v14  ;;  %v1545_v60 = vld [vmem:[#allocation5 + $0x1ac] sm:$0xf0]  ;;  %v1437_v63 = vld [vmem:[#allocation5 + $0x1b0] sm:$0xf0]  ;;  %v1546_v1 = vld [vmem:[#allocation5 + $0x1b4] sm:$0xf0] }
  0x3c   : > { %v1436_v62 = vor.u32 %v1545_v60, %v1435_v59  ;;  %v1440_v2 = vor.u32 %v1541_v61, %v1437_v63  ;;  %v1444_v3 = vor.u32 %v1546_v1, %v1443_v0  ;;  %v1542_v4 = vld [vmem:[#allocation5 + $0x19c] sm:$0xf]  ;;  %v1403_v7 = vld [vmem:[#allocation5 + $0x150] sm:$0xf]  ;;  %v1533_v9 = vld [vmem:[#allocation5 + $0x154] sm:$0xf] }
  0x3d   : > { %902 = vmatpush.bf16.msrb.mxu1 %v1368_v57  ;;  %891 = vmatpush.bf16.msrb.mxu0 %v1268_v28  ;;  %v1477_v57 = vld [vmem:[#allocation5 + $0x1f8] sm:$0xf0]  ;;  %v1537_v8 = vld [vmem:[#allocation5 + $0x16c] sm:$0xf0]  ;;  %v1405_v11 = vld [vmem:[#allocation5 + $0x170] sm:$0xf0] }
  0x3e   : > { %863 = vmatpush.bf16.msra.mxu2 %v1260_v25  ;;  %v1480_v58 = vor.u32 %v1550_v56, %v1477_v57  ;;  %v1404_v10 = vor.u32 %v1537_v8, %v1403_v7  ;;  %v1538_v13 = vld [vmem:[#allocation5 + $0x174] sm:$0xf0]  ;;  %v1408_v14 = vor.u32 %v1533_v9, %v1405_v11  ;;  %v1534_v16 = vld [vmem:[#allocation5 + $0x15c] sm:$0xf]  ;;  %v1529_v20 = vld [vmem:[#allocation5 + $0x12c] sm:$0xf0] }
  0x3f   : > { %877 = vmatpush.bf16.msra.mxu3 %v1264_v27  ;;  %v1413_v17 = vld [vmem:[#allocation5 + $0x178] sm:$0xf0]  ;;  %v1525_v21 = vld [vmem:[#allocation5 + $0x114] sm:$0xf]  ;;  %v1379_v24 = vld [vmem:[#allocation5 + $0x118] sm:$0xf] }
  0x40   : > { %v1416_v18 = vor.u32 %v1534_v16, %v1413_v17  ;;  %v1373_v23 = vld [vmem:[#allocation5 + $0x130] sm:$0xf0]  ;;  %v1530_v25 = vld [vmem:[#allocation5 + $0x134] sm:$0xf0]  ;;  %v1526_v28 = vld [vmem:[#allocation5 + $0x11c] sm:$0xf] }
  0x41   : > { %903 = vmatpush.bf16.msrb.mxu1 %v1336_v6  ;;  %892 = vmatpush.bf16.msrb.mxu0 %v1236_v44  ;;  %v1380_v27 = vor.u32 %v1530_v25, %v1379_v24  ;;  %v1381_v29 = vld [vmem:[#allocation5 + $0x138] sm:$0xf0]  ;;  %v1517_v33 = vld [vmem:[#allocation5 + $0xd4] sm:$0xf]  ;;  %v1522_v37 = vld [vmem:[#allocation5 + $0xf4] sm:$0xf0] }
  0x42   : > { %864 = vmatpush.bf16.msra.mxu2 %v1228_v40  ;;  %v1384_v30 = vor.u32 %v1526_v28, %v1381_v29  ;;  %v1341_v35 = vld [vmem:[#allocation5 + $0xf0] sm:$0xf0]  ;;  %v1518_v40 = vld [vmem:[#allocation5 + $0xdc] sm:$0xf]  ;;  %v1513_v44 = vld [vmem:[#allocation5 + $0xac] sm:$0xf0] }
  0x43   : > { %878 = vmatpush.bf16.msra.mxu3 %v1232_v43  ;;  %v1344_v38 = vor.u32 %v1517_v33, %v1341_v35  ;;  %v1315_v49 = vld [vmem:[#allocation5 + $0x98] sm:$0xf]  ;;  %v1510_v51 = vld [vmem:[#allocation5 + $0x9c] sm:$0xf]  ;;  %v1501_v57 = vld [vmem:[#allocation5 + $0x54] sm:$0xf] }
  0x44   : > { %v1317_v53 = vld [vmem:[#allocation5 + $0xb8] sm:$0xf0]  ;;  %v1283_v59 = vld [vmem:[#allocation5 + $0x58] sm:$0xf]  ;;  %v1637_v16 = vld [vmem:[%s1992_s4] ss:$0 sm:$0xff] }
  0x45   : > { %904 = vmatpush.bf16.msrb.mxu1 %v1304_v19  ;;  %941 = vmatpush.bf16.msra.mxu0 %v1476_v55  ;;  %v1371_v19 = vld [vmem:[#allocation5 + $0x110] sm:$0xf]  ;;  %v1320_v56 = vor.u32 %v1510_v51, %v1317_v53  ;;  %v1506_v61 = vld [vmem:[#allocation5 + $0x74] sm:$0xf0]  ;;  %v1285_v63 = vld [vmem:[#allocation5 + $0x78] sm:$0xf0] }
  0x46   : > { %913 = vmatpush.bf16.msrb.mxu2 %v1468_v50  ;;  %v1372_v22 = vor.u32 %v1529_v20, %v1371_v19  ;;  %v1514_v50 = vld [vmem:[#allocation5 + $0xb4] sm:$0xf0]  ;;  %v1505_v55 = vld [vmem:[#allocation5 + $0x6c] sm:$0xf0]  ;;  %v1284_v1 = vor.u32 %v1506_v61, %v1283_v59  ;;  %v1494_v9 = vld [vmem:[#allocation5 + $0x1c] sm:$0xf] }
  0x47   : > { %927 = vmatpush.bf16.msrb.mxu3 %v1472_v54  ;;  %v1316_v52 = vor.u32 %v1514_v50, %v1315_v49  ;;  %v1275_v54 = vld [vmem:[#allocation5 + $0x50] sm:$0xf]  ;;  %v1251_v7 = vld [vmem:[#allocation5 + $0x18] sm:$0xf]  ;;  %v1933_v25 = vld [vmem:[%s1994_s6] sm:$0xff]  ;;  %s1482_s3 = sshll.u32 %s1776_s27, 3 }
  0x48   : > { %v1276_v60 = vor.u32 %v1505_v55, %v1275_v54  ;;  %v1498_v8 = vld [vmem:[#allocation5 + $0x34] sm:$0xf0]  ;;  %v524_v29 = vperm.slane %v1933_v25, 3  ;;  %v528_v59 = vperm.slane %v1933_v25, 7  ;;  %vm1057_vm3 = vcmask 1040384   ;;  %s1086_s21 = scalar_lea.hbm %s1995_s7, %s1482_s3  ;;  %s342_s27 = scalar_lea.vmem [#allocation7], %s1946_s19 }
  0x49   : > { %905 = vmatpush.bf16.msrb.mxu1 %v1272_v32  ;;  %942 = vmatpush.bf16.msra.mxu0 %v1444_v3  ;;  %v1521_v32 = vld [vmem:[#allocation5 + $0xec] sm:$0xf0]  ;;  %vm1059_vm4 = vcmask 1042434   ;;  %vm1065_vm5 = vcmask 1046534   ;;  %vm1063_vm6 = vcmask 1044484   ;;  %vm1061_vm7 = vcmask 1041408  }
  0x4a   : > { %914 = vmatpush.bf16.msrb.mxu2 %v1436_v62  ;;  %v1502_v62 = vld [vmem:[#allocation5 + $0x5c] sm:$0xf]  ;;  %v1497_v3 = vld [vmem:[#allocation5 + $0x2c] sm:$0xf0]  ;;  %vm1067_vm8 = vcmask 1045508   ;;  %s1088_s22 = sshll.u32 %s342_s27, 4  ;;  %s1089_s22 = int_to_ptr.vmem [resolvable:$true] %s1088_s22 }
  0x4b   : > { %928 = vmatpush.bf16.msrb.mxu3 %v1440_v2  ;;  %v1243_v2 = vld [vmem:[#allocation5 + $0x10] sm:$0xf]  ;;  %s1090_s23 = sshll.u32 %s1086_s21, 4  ;;  %s1074_s16 = scalar_lea.sflag [#allocation4], %s340_s18  ;;  %s1091_s23 = int_to_ptr.hbm [resolvable:$true] %s1090_s23 }
  0x4c   : > { %v1244_v11 = vor.u32 %v1497_v3, %v1243_v2  ;;  %s1712_s30 = sshra.s32 %s1091_s23, 4  ;;  %s1718_s17 = scalar_lea.hbm %s1995_s7, 16  ;;  %s1713_s30 = int_to_ptr.hbm [resolvable:$true] %s1712_s30 }
  0x4d   : > { %906 = vmatpush.bf16.msrb.mxu1 %v1240_v45  ;;  %v1509_v45 = vld [vmem:[#allocation5 + $0x94] sm:$0xf]  ;;  %s1714_s8 = scalar_lea.hbm %s1713_s30, 8  ;;  %p1719_p5 = scmp.lt.s32.totalorder %s1713_s30, %s1995_s7 }
  0x4e   : > { %915 = vmatpush.bf16.msrb.mxu2 %v1404_v10  ;;  %v1253_v10 = vld [vmem:[#allocation5 + $0x38] sm:$0xf0]  ;;  %p1715_p1 = scmp.ne.s32.totalorder %s1713_s30, %s1714_s8  ;;  %p1720_p6 = scmp.lt.s32.totalorder %s1718_s17, %s1714_s8 }
  0x4f   : > { %929 = vmatpush.bf16.msrb.mxu3 %v1408_v14  ;;  %v1256_v14 = vor.u32 %v1494_v9, %v1253_v10 }
  0x50   : > { %p1716_p2 = pnand %p1715_p1, %p1872_p4  ;;  %p1721_p7 = por %p1720_p6, %p1719_p5 }
  0x52   : > { %916 = vmatpush.bf16.msrb.mxu2 %v1372_v22  ;;  %p1717_p3 = pneg %p1716_p2 }
  0x54   : > { %p1722_p9 = pnand %p1721_p7, %p1717_p3 }
  0xa3   : > { %v390_v5 = vpop.f32.mrf.mxu0 }
  0xa4   : > { %v391_v26 = vadd.f32 %v1636_v12, %v390_v5  ;;  %v1445_v5 = vld [vmem:[#allocation5 + $0x1b8] sm:$0xf0] }
  0xa5   : > { %v1448_v6 = vor.u32 %v1542_v4, %v1445_v5  ;;  %v1493_v4 = vld [vmem:[#allocation5 + $0x14] sm:$0xf]  ;;  %v1288_v5 = vor.u32 %v1502_v62, %v1285_v63 }
  0xa6   : > { %v395_v41 = vmax.f32 %v391_v26, 0.0  ;;  %v1376_v26 = vor.u32 %v1525_v21, %v1373_v23 }
  0xa8   : > { %930 = vmatpush.bf16.msrb.mxu3 %v1376_v26  ;;  %v523_v26 = vperm.slane %v1933_v25, 2 }
  0xab   : > { %v392_v31 = vpop.f32.mrf.mxu0 }
  0xac   : > { %v393_v36 = vadd.f32 %v1636_v12, %v392_v31  ;;  %v1411_v12 = vld [vmem:[#allocation5 + $0x158] sm:$0xf]  ;;  %v1339_v31 = vld [vmem:[#allocation5 + $0xd0] sm:$0xf]  ;;  %931 = vmatpush.bf16.msrb.mxu3 %v1344_v38 }
  0xad   : > { %v1412_v15 = vor.u32 %v1538_v13, %v1411_v12  ;;  %v1340_v34 = vor.u32 %v1521_v32, %v1339_v31  ;;  %v1252_v13 = vor.u32 %v1498_v8, %v1251_v7  ;;  %v522_v31 = vperm.slane %v1933_v25, 1 }
  0xae   : > { %v396_v42 = vmax.f32 %v393_v36, 0.0  ;;  %v1347_v36 = vld [vmem:[#allocation5 + $0xd8] sm:$0xf] }
  0xaf   : > { %943 = vmatpush.bf16.msra.mxu0 %v1412_v15  ;;  %v1348_v39 = vor.u32 %v1522_v37, %v1347_v36  ;;  %917 = vmatpush.bf16.msrb.mxu2 %v1340_v34  ;;  %v521_v37 = vperm.slane %v1933_v25, 0 }
  0xb0   : > { %v397_v46 = vpack.c.bf16 %v396_v42, %v395_v41  ;;  %v1349_v41 = vld [vmem:[#allocation5 + $0xf8] sm:$0xf0]  ;;  %v1307_v42 = vld [vmem:[#allocation5 + $0x90] sm:$0xf] }
  0xb1   : > { %v1352_v43 = vor.u32 %v1518_v40, %v1349_v41  ;;  %v1308_v47 = vor.u32 %v1513_v44, %v1307_v42 }
  0xb2   : > { %1224 = vmatmul.msk.bf16.vlgmr.msra.gmra.mxu1 %vm434_vm2, %v397_v46  ;;  %v1309_v46 = vld [vmem:[#allocation5 + $0xb0] sm:$0xf0] }
  0xb3   : > { %955 = vmatpush.bf16.msra.mxu1 %v1480_v58  ;;  %944 = vmatpush.bf16.msra.mxu0 %v1380_v27  ;;  %v1312_v48 = vor.u32 %v1509_v45, %v1309_v46  ;;  %v1277_v58 = vld [vmem:[#allocation5 + $0x70] sm:$0xf0] }
  0xb4   : > { %918 = vmatpush.bf16.msrb.mxu2 %v1308_v47  ;;  %v1280_v0 = vor.u32 %v1501_v57, %v1277_v58  ;;  %v527_v57 = vperm.slane %v1933_v25, 6 }
  0xb5   : > { %932 = vmatpush.bf16.msrb.mxu3 %v1312_v48 }
  0xb7   : > { %956 = vmatpush.bf16.msra.mxu1 %v1448_v6  ;;  %945 = vmatpush.bf16.msra.mxu0 %v1348_v39  ;;  %v1245_v6 = vld [vmem:[#allocation5 + $0x30] sm:$0xf0] }
  0xb8   : > { %919 = vmatpush.bf16.msrb.mxu2 %v1276_v60  ;;  %v1248_v12 = vor.u32 %v1493_v4, %v1245_v6  ;;  %v525_v4 = vperm.slane %v1933_v25, 4  ;;  %v526_v6 = vperm.slane %v1933_v25, 5 }
  0xb9   : > { %933 = vmatpush.bf16.msrb.mxu3 %v1280_v0 }
  0xbb   : > { %957 = vmatpush.bf16.msra.mxu1 %v1416_v18  ;;  %946 = vmatpush.bf16.msra.mxu0 %v1316_v52 }
  0xbc   : > { %920 = vmatpush.bf16.msrb.mxu2 %v1244_v11 }
  0xbd   : > { %934 = vmatpush.bf16.msrb.mxu3 %v1248_v12 }
  0xbf   : > { %958 = vmatpush.bf16.msra.mxu1 %v1384_v30  ;;  %947 = vmatpush.bf16.msra.mxu0 %v1284_v1 }
  0xc3   : > { %959 = vmatpush.bf16.msra.mxu1 %v1352_v43  ;;  %948 = vmatpush.bf16.msra.mxu0 %v1252_v13 }
  0xc7   : > { %960 = vmatpush.bf16.msra.mxu1 %v1320_v56 }
  0xcb   : > { %961 = vmatpush.bf16.msra.mxu1 %v1288_v5 }
  0xcf   : > { %962 = vmatpush.bf16.msra.mxu1 %v1256_v14 }
 0x12f   : > { %v447_v15 = vpop.f32.mrf.mxu1 }
 0x130   : > { %v448_v17 = vadd.f32 %v1637_v16, %v447_v15 }
 0x132   : > { %v452_v20 = vmax.f32 %v448_v17, 0.0 }
 0x137   : > { %v449_v18 = vpop.f32.mrf.mxu1 }
 0x138   : > { %v450_v19 = vadd.f32 %v1637_v16, %v449_v18 }
 0x13a   : > { %v453_v21 = vmax.f32 %v450_v19, 0.0 }
 0x13c   : > { %v454_v22 = vpack.c.bf16 %v453_v21, %v452_v20 }
 0x13e   : > { %865 = vmatmul.bf16.vlgmr.msra.gmra.mxu2 %v454_v22  ;;  %879 = vmatmul.bf16.vlgmr.msra.gmra.mxu3 %v454_v22 }
 0x13f   : > { %893 = vmatmul.bf16.vlgmr.msrb.gmra.mxu0 %v454_v22  ;;  %907 = vmatmul.bf16.vlgmr.msrb.gmra.mxu1 %v454_v22 }
 0x14e   : > { %921 = vmatmul.bf16.vlgmr.msrb.gmra.mxu2 %v454_v22  ;;  %935 = vmatmul.bf16.vlgmr.msrb.gmra.mxu3 %v454_v22 }
 0x14f   : > { %949 = vmatmul.bf16.vlgmr.msra.gmra.mxu0 %v454_v22  ;;  %963 = vmatmul.bf16.vlgmr.msra.gmra.mxu1 %v454_v22 }
 0x1bc   : > { %v894_v23 = vpop.f32.mrf.mxu0  ;;  %v908_v24 = vpop.f32.mrf.mxu1 }
 0x1bd   : > { %v895_v30 = vadd.f32 %v894_v23, %v523_v26  ;;  %v909_v36 = vadd.f32 %v908_v24, %v524_v29 }
 0x1bf   : > { %v971_v39 = vmax.f32 %v895_v30, 0.0  ;;  %v972_v47 = vmax.f32 %v909_v36, 0.0 }
 0x1c1   : > { %v866_v27 = vpop.f32.mrf.mxu2  ;;  %v880_v28 = vpop.f32.mrf.mxu3 }
 0x1c2   : > { %v881_v40 = vadd.f32 %v880_v28, %v522_v31  ;;  %v867_v48 = vadd.f32 %v866_v27, %v521_v37 }
 0x1c4   : > { %v896_v32 = vpop.f32.mrf.mxu0  ;;  %v910_v33 = vpop.f32.mrf.mxu1  ;;  %v970_v49 = vmax.f32 %v881_v40, 0.0  ;;  %v969_v58 = vmax.f32 %v867_v48, 0.0 }
 0x1c5   : > { %v897_v34 = vadd.f32 %v896_v32, %v523_v26  ;;  %v911_v35 = vadd.f32 %v910_v33, %v524_v29 }
 0x1c7   : > { %v979_v38 = vmax.f32 %v897_v34, 0.0  ;;  %v980_v41 = vmax.f32 %v911_v35, 0.0 }
 0x1c9   : > { %v868_v42 = vpop.f32.mrf.mxu2  ;;  %v882_v43 = vpop.f32.mrf.mxu3  ;;  %v1000_v44 = vmax.f32 %v971_v39, %v979_v38  ;;  %v1007_v53 = vmax.f32 %v972_v47, %v980_v41 }
 0x1ca   : > { %v869_v45 = vadd.f32 %v868_v42, %v521_v37  ;;  %v883_v46 = vadd.f32 %v882_v43, %v522_v31 }
 0x1cb   : > { %v1001_v55 = vrot.slane %v1000_v44, 4  ;;  %v1008_v61 = vrot.slane %v1007_v53, 4 }
 0x1cc   : > { %v978_v50 = vmax.f32 %v883_v46, 0.0  ;;  %v950_v51 = vpop.f32.mrf.mxu0  ;;  %v964_v52 = vpop.f32.mrf.mxu1  ;;  %v977_v54 = vmax.f32 %v869_v45, 0.0 }
 0x1cd   : > { %v1002_v1 = vmax.f32 %v1000_v44, %v1001_v55  ;;  %v951_v2 = vadd.f32 %v950_v51, %v527_v57  ;;  %v965_v3 = vadd.f32 %v964_v52, %v528_v59  ;;  %v1009_v9 = vmax.f32 %v1007_v53, %v1008_v61 }
 0x1ce   : > { %v993_v56 = vmax.f32 %v970_v49, %v978_v50  ;;  %v986_v62 = vmax.f32 %v969_v58, %v977_v54 }
 0x1cf   : > { %v1003_v13 = vrot.slane %v1002_v1, 2  ;;  %v975_v14 = vmax.f32 %v951_v2, 0.0  ;;  %v976_v15 = vmax.f32 %v965_v3, 0.0  ;;  %v1010_v21 = vrot.slane %v1009_v9, 2 }
 0x1d0   : > { %v994_v60 = vrot.slane %v993_v56, 4  ;;  %v987_v10 = vrot.slane %v986_v62, 4 }
 0x1d1   : > { %v922_v63 = vpop.f32.mrf.mxu2  ;;  %v936_v0 = vpop.f32.mrf.mxu3  ;;  %v1004_v29 = vmax.f32 %v1002_v1, %v1003_v13  ;;  %v1011_v37 = vmax.f32 %v1009_v9, %v1010_v21 }
 0x1d2   : > { %v995_v5 = vmax.f32 %v993_v56, %v994_v60  ;;  %v923_v16 = vadd.f32 %v922_v63, %v525_v4  ;;  %v937_v20 = vadd.f32 %v936_v0, %v526_v6  ;;  %v988_v22 = vmax.f32 %v986_v62, %v987_v10 }
 0x1d3   : > { %v1005_v45 = vrot.slane %v1004_v29, 1  ;;  %v1012_v49 = vrot.slane %v1011_v37, 1 }
 0x1d4   : > { %v952_v7 = vpop.f32.mrf.mxu0  ;;  %v966_v8 = vpop.f32.mrf.mxu1  ;;  %v996_v19 = vrot.slane %v995_v5, 2  ;;  %v973_v30 = vmax.f32 %v923_v16, 0.0  ;;  %v974_v34 = vmax.f32 %v937_v20, 0.0  ;;  %v989_v38 = vrot.slane %v988_v22, 2 }
 0x1d5   : > { %v953_v11 = vadd.f32 %v952_v7, %v527_v57  ;;  %v967_v12 = vadd.f32 %v966_v8, %v528_v59  ;;  %v1006_v60 = vmax.f32 %v1004_v29, %v1005_v45  ;;  %v1013_v61 = vmax.f32 %v1011_v37, %v1012_v49 }
 0x1d6   : > { %v997_v33 = vmax.f32 %v995_v5, %v996_v19  ;;  %v990_v50 = vmax.f32 %v988_v22, %v989_v38 }
 0x1d7   : > { %v983_v17 = vmax.f32 %v953_v11, 0.0  ;;  %v984_v18 = vmax.f32 %v967_v12, 0.0  ;;  %v1052_v7 = vrot.slane %v1013_v61, 5 }
 0x1d8   : > { %v998_v46 = vrot.slane %v997_v33, 1  ;;  %v991_v62 = vrot.slane %v990_v50, 1 }
 0x1d9   : > { %v1028_v23 = vmax.f32 %v975_v14, %v983_v17  ;;  %v1035_v24 = vmax.f32 %v976_v15, %v984_v18  ;;  %v924_v26 = vpop.f32.mrf.mxu2  ;;  %v938_v25 = vpop.f32.mrf.mxu3 }
 0x1da   : > { %v925_v27 = vadd.f32 %v924_v26, %v525_v4  ;;  %v939_v28 = vadd.f32 %v938_v25, %v526_v6  ;;  %v999_v57 = vmax.f32 %v997_v33, %v998_v46  ;;  %v1051_v6 = vrot.slane %v1006_v60, 6 }
 0x1db   : > { %v1029_v31 = vrot.slane %v1028_v23, 4  ;;  %v1036_v32 = vrot.slane %v1035_v24, 4  ;;  %v992_v8 = vmax.f32 %v990_v50, %v991_v62 }
 0x1dc   : > { %v981_v35 = vmax.f32 %v925_v27, 0.0  ;;  %v982_v36 = vmax.f32 %v939_v28, 0.0  ;;  %v1050_v3 = vrot.slane %v999_v57, 7  ;;  %v1060_v16 = vsel %vm1059_vm4, %v1051_v6, %v1052_v7 }
 0x1dd   : > { %v1030_v39 = vmax.f32 %v1028_v23, %v1029_v31  ;;  %v1037_v40 = vmax.f32 %v1035_v24, %v1036_v32 }
 0x1de   : > { %v1014_v41 = vmax.f32 %v973_v30, %v981_v35  ;;  %v1021_v42 = vmax.f32 %v974_v34, %v982_v36  ;;  %v1058_v13 = vsel %vm1057_vm3, %v992_v8, %v1050_v3 }
 0x1df   : > { %v1031_v43 = vrot.slane %v1030_v39, 2  ;;  %v1038_v44 = vrot.slane %v1037_v40, 2  ;;  %v1062_v19 = vsel %vm1061_vm7, %v1058_v13, %v1060_v16 }
 0x1e0   : > { %v1015_v47 = vrot.slane %v1014_v41, 4  ;;  %v1022_v48 = vrot.slane %v1021_v42, 4 }
 0x1e1   : > { %v1032_v51 = vmax.f32 %v1030_v39, %v1031_v43  ;;  %v1039_v52 = vmax.f32 %v1037_v40, %v1038_v44 }
 0x1e2   : > { %v1016_v53 = vmax.f32 %v1014_v41, %v1015_v47  ;;  %v1023_v54 = vmax.f32 %v1021_v42, %v1022_v48 }
 0x1e3   : > { %v1033_v55 = vrot.slane %v1032_v51, 1  ;;  %v1040_v56 = vrot.slane %v1039_v52, 1 }
 0x1e4   : > { %v1017_v58 = vrot.slane %v1016_v53, 2  ;;  %v1024_v59 = vrot.slane %v1023_v54, 2 }
 0x1e5   : > { %v1034_v63 = vmax.f32 %v1032_v51, %v1033_v55  ;;  %v1041_v0 = vmax.f32 %v1039_v52, %v1040_v56 }
 0x1e6   : > { %v1018_v1 = vmax.f32 %v1016_v53, %v1017_v58  ;;  %v1025_v2 = vmax.f32 %v1023_v54, %v1024_v59 }
 0x1e7   : > { %v1055_v9 = vrot.slane %v1034_v63, 2  ;;  %v1056_v10 = vrot.slane %v1041_v0, 1 }
 0x1e8   : > { %v1019_v4 = vrot.slane %v1018_v1, 1  ;;  %v1026_v5 = vrot.slane %v1025_v2, 1 }
 0x1e9   : > { %v1066_v17 = vsel %vm1065_vm5, %v1055_v9, %v1056_v10 }
 0x1ea   : > { %v1020_v11 = vmax.f32 %v1018_v1, %v1019_v4  ;;  %v1027_v12 = vmax.f32 %v1025_v2, %v1026_v5 }
 0x1ec   : > { %v1053_v14 = vrot.slane %v1020_v11, 4  ;;  %v1054_v15 = vrot.slane %v1027_v12, 3 }
 0x1ee   : > { %v1064_v18 = vsel %vm1063_vm6, %v1053_v14, %v1054_v15 }
 0x1ef   : > { %v1068_v20 = vsel %vm1067_vm8, %v1064_v18, %v1066_v17 }
 0x1f0   : > { %v1069_v21 = vsel %vm377_vm0, %v1062_v19, %v1068_v20 }
 0x1f1   : > { %1072 = vst [vmem:[%s342_s27] sm:$0xff] %v1069_v21 }
 0x1f2   : > { %1725 = shalt.err (!%p1722_p9)
}
 0x1f3   : > { %1563 = dma.vmem_to_hbm [thread:$0]  (%p1872_p4), %s1089_s22, 128, %s1091_s23, %s1074_s16  }
 0x1f4 PF: > { %p1580_p10 = scmp.ge.s32.totalorder %s1784_s29, 2  ;;  %s1102_s18 = sand.u32 1, %s1764_s24  }
 0x1f5   : > { %s1103_s15 = scalar_lea.sflag [#allocation4], %s1102_s18 }
 0x1f6   : > { %p1573_p11 = pnand %p1580_p10, %p1879_p8 }
 0x1f8   : > { %p1574_p12 = pneg %p1573_p11 }
 0x1fa   : > { %1759 = dma.done.wait (%p1574_p12), %s1103_s15, 128  }
 0x1fb   : > { %1761 = vsyncadd (%p1574_p12), %s1103_s15, 4294967168  ;;  %s22_s29 = sadd.s32 1, %s1784_s29   ;;  %s2002_s24 = smov %s1768_s25 }
 0x1fc   : > { %p19_p13 = scmp.ge.s32.totalorder %s22_s29, 4   ;;  %s2003_s25 = smov %s1772_s26 }
 0x1fd   : > { %s2004_s26 = smov %s1885_s14  ;;  %s2005_s27 = smov %s1780_s28 }
 0x1fe   : > { %s2006_s28 = smov %s2008_s9  ;;  %21 = sbr.rel (!%p19_p13) target bundleno = 8 (0x8), region = 96 }
 0x203   :  { %1109 = vsyncpa [#allocation3], 1 }
 0x204   :  { %1111 = vsyncpa [#allocation3 + $0x1], 1 }
 0x205   :  { %1112 = vsyncpa [#allocation6], 1 }
 0x206   :  { %1113 = vsyncpa [#allocation4], 1 }
 0x207   :  { %1115 = vsyncpa [#allocation4 + $0x1], 1 }

</bundles_post_ra>
